<compile_context>
chip_gen: v7x
topology: tpu7x:2x2x1
jax: 0.10.0
libtpu: 0.0.40
codegen_flags: <defaults>
</compile_context>

<pallas_src>
import functools
import math

import jax
import jax.numpy as jnp
from jax import lax
from jax.experimental import pallas as pl
from jax.experimental.pallas import tpu as pltpu


# --------------------------- VMEM budget / tiling --------------------------- #

@functools.lru_cache(maxsize=None)
def _vmem_budget():
    """(per-step tile budget, scoped vmem limit) in bytes, per TPU generation."""
    cap = 64 << 20                                  # conservative default (v7x)
    try:
        info = pltpu.get_tpu_info()
        for attr in ("vmem_capacity_bytes", "vmem_bytes", "vmem_capacity"):
            v = getattr(info, attr, None)
            if isinstance(v, int) and v > 0:
                cap = v
                break
    except Exception:
        pass
    if cap >= (100 << 20):                          # v5e / v6e: 128 MiB physical
        return 20 << 20, 64 << 20
    return 12 << 20, 40 << 20                       # v7x: 64 MiB per TensorCore


def _pick_tile_n(n, H, W, Dl, C, b_in_kernel, budget, use_separable):
    """Largest lane-aligned query tile whose per-step VMEM footprint fits.

    Counts ALL per-step residents: double-buffered x/out tiles, the (double
    buffered) resident local latent, the sy/sx one-hot builds and the matmul
    temporaries ((HW,tN) scatter for the dense form, (n_codes*H,tN) partial for
    the separable form).
    """
    HW = H * W
    if n <= 128:
        return n                                    # block == full dim
    n_128 = ((n + 127) // 128) * 128
    cands = []
    if n_128 <= 4096:
        cands.append(n_128)                         # whole N in one grid step
    cands += [c for c in (2048, 1024, 512, 256) if c < n_128]
    cands.append(128)
    for tn in cands:
        x_b = 2 * 2 * tn * 4                        # 2-deep x tile
        out_b = 2 * b_in_kernel * C * tn * 4        # 2-deep out tile
        l_b = 2 * b_in_kernel * Dl * HW * 4         # resident latent (2 bufs)
        sel_b = 3 * (H + W) * tn * 4                # iotas + sy/sx one-hots
        if use_separable:
            mm_b = b_in_kernel * Dl * H * tn * 4    # (n_codes*H, tN) partial
        else:
            mm_b = 2 * HW * tn * 4                  # outer product + (HW,tN)
        samp_b = b_in_kernel * Dl * tn * 4
        if x_b + out_b + l_b + sel_b + mm_b + samp_b <= budget:
            return tn
    return 128


def _pick_tile_f(hw, Dl, C, budget):
    """No-query path tile over the flattened spatial dim.  tf must divide HW
    exactly (fixes the old HW % 512 != 0 truncation bug); large lane-dense
    candidates first since this path is a pure HBM-bound copy."""
    if hw <= 512:
        return hw
    for tf in (4096, 2048, 1024, 512, 256, 128):
        if hw % tf == 0 and 2 * (Dl + C) * tf * 4 <= budget:
            return tf
    return hw   # no aligned divisor: one full-width block per batch element


# ------------------------------ Pallas kernels ------------------------------ #

def _concat_cf_kernel(g_ref, l_ref, o_ref):
    # No-query path, channels-first output tile.
    #   g_ref: (1, Dg, 1)   l_ref: (1, Dl, tF)   o_ref: (1, Dg+Dl, tF)
    # Two lane-dense slice stores; no in-kernel transpose / concat.
    # (Dg a multiple of 8 keeps both stores sublane-aligned; other Dg is
    #  still correct, just masked.)
    dg = g_ref.shape[1]
    tf = o_ref.shape[2]
    o_ref[0, :dg, :] = jnp.broadcast_to(g_ref[0], (dg, tf))
    o_ref[0, dg:, :] = l_ref[0]


def _bilinear_onehots(xt, *, H, W):
    """xt: (2, tN) coords-first queries ([0]=row/H, [1]=col/W) in [-1, 1].

    Returns (sy, sx) 2-tap one-hot scatter weights, shapes (H, tN) and (W, tN).
    Matches grid_sample(bilinear, padding_mode='border', align_corners=True);
    coincident taps at clamped borders get zero residual weight, so the sum of
    taps is exactly the bilinear sample.
    """
    tn = xt.shape[-1]
    gy = xt[0:1, :]                                 # (1, tN) row coord
    gx = xt[1:2, :]                                 # (1, tN) col coord
    fy = jnp.clip((gy + 1.0) * 0.5 * (H - 1), 0.0, float(max(H - 1, 0)))
    fx = jnp.clip((gx + 1.0) * 0.5 * (W - 1), 0.0, float(max(W - 1, 0)))
    y0f = jnp.floor(fy)
    x0f = jnp.floor(fx)
    wy1 = fy - y0f
    wx1 = fx - x0f
    y0 = jnp.clip(y0f.astype(jnp.int32), 0, H - 1)
    x0 = jnp.clip(x0f.astype(jnp.int32), 0, W - 1)
    y1 = jnp.minimum(y0 + 1, H - 1)
    x1 = jnp.minimum(x0 + 1, W - 1)
    hi = lax.broadcasted_iota(jnp.int32, (H, tn), 0)
    wi = lax.broadcasted_iota(jnp.int32, (W, tn), 0)
    sy = jnp.where(hi == y0, 1.0 - wy1, 0.0) + jnp.where(hi == y1, wy1, 0.0)
    sx = jnp.where(wi == x0, 1.0 - wx1, 0.0) + jnp.where(wi == x1, wx1, 0.0)
    return sy, sx


def _sample_from_onehots(l2d, sy, sx, *, H, W, n_codes, use_separable):
    """l2d: (n_codes*H, W) if use_separable else (n_codes, H*W).
    Returns (n_codes, tN) bilinear samples."""
    tn = sy.shape[-1]
    if use_separable:
        # Two-stage separable contraction: never materializes the (HW, tN)
        # scatter matrix (key for large H*W on v7x's 64 MiB VMEM).
        tmp = jnp.dot(l2d, sx, preferred_element_type=jnp.float32)   # (nc*H, tN)
        tmp = tmp.reshape(n_codes, H, tn)
        return jnp.sum(tmp * sy[None, :, :], axis=1)                 # (nc, tN)
    # Small H*W: dense scatter as an outer product + one MXU matmul.
    st = (sy[:, None, :] * sx[None, :, :]).reshape(H * W, tn)        # (HW, tN)
    return jnp.dot(l2d, st, preferred_element_type=jnp.float32)      # (nc, tN)


def _grid_sample_shared_kernel(g_ref, l_ref, xt_ref, o_ref, *, H, W, B, Dl,
                               use_separable):
    # Shared-query fast path: batch folded into the kernel, grid over N only.
    #   g_ref : (B, Dg, 1)                        global codes (resident)
    #   l_ref : (B*Dl*H, W) or (B*Dl, H*W)        flattened latents (resident)
    #   xt_ref: (1, 2, tN)                        shared coords-first queries
    #   o_ref : (B, Dg+Dl, tN)                    channels-first output tile
    dg = g_ref.shape[1]
    tn = o_ref.shape[2]
    sy, sx = _bilinear_onehots(xt_ref[0], H=H, W=W)
    sampled = _sample_from_onehots(l_ref[...], sy, sx, H=H, W=W,
                                   n_codes=B * Dl, use_separable=use_separable)
    for b in range(B):                              # static unroll (small B)
        o_ref[b, :dg, :] = jnp.broadcast_to(g_ref[b], (dg, tn))
        o_ref[b, dg:, :] = sampled[b * Dl:(b + 1) * Dl, :]


def _grid_sample_batched_kernel(g_ref, l_ref, xt_ref, o_ref, *, H, W, Dl,
                                use_separable):
    # Per-batch-query path (x batch == latent batch).
    #   g_ref : (1, Dg, 1)
    #   l_ref : (1, Dl*H, W) or (1, Dl, H*W)      resident per batch element
    #   xt_ref: (1, 2, tN)
    #   o_ref : (1, Dg+Dl, tN)
    dg = g_ref.shape[1]
    tn = o_ref.shape[2]
    sy, sx = _bilinear_onehots(xt_ref[0], H=H, W=W)
    sampled = _sample_from_onehots(l_ref[0], sy, sx, H=H, W=W,
                                   n_codes=Dl, use_separable=use_separable)
    o_ref[0, :dg, :] = jnp.broadcast_to(g_ref[0], (dg, tn))
    o_ref[0, dg:, :] = sampled


# ------------------------------ Python wrappers ----------------------------- #

class HybridLatentCode:
    def __init__(self, global_latent, local_latent):
        # global_latent: (B, Dg)   local_latent: (B, Dl, H, W)
        self.global_latent = global_latent
        self.local_latent = local_latent
        self.batch_size = global_latent.shape[0]

    def forward(self, x=None, channels_last=True):
        g = self.global_latent.astype(jnp.float32)
        l = self.local_latent.astype(jnp.float32)
        B, Dg = g.shape
        Dl, H, W = l.shape[1], l.shape[2], l.shape[3]
        HW = H * W
        C = Dg + Dl
        g3 = g.reshape(B, Dg, 1)                    # glue reshape
        budget, vmem_limit = _vmem_budget()

        if x is None:
            tf = _pick_tile_f(HW, Dl, C, budget)
            l_flat = l.reshape(B, Dl, HW)
            out_cf = pl.pallas_call(
                _concat_cf_kernel,
                out_shape=jax.ShapeDtypeStruct((B, C, HW), jnp.float32),
                grid=(B, HW // tf),
                in_specs=[
                    pl.BlockSpec((1, Dg, 1), lambda b, j: (b, 0, 0)),
                    pl.BlockSpec((1, Dl, tf), lambda b, j: (b, 0, j)),
                ],
                out_specs=pl.BlockSpec((1, C, tf), lambda b, j: (b, 0, j)),
                compiler_params=pltpu.CompilerParams(
                    dimension_semantics=("parallel", "parallel"),
                    vmem_limit_bytes=vmem_limit),
            )(g3, l_flat)
            # Mirrors the module's .permute(0, 2, 1); pure layout, left to XLA.
            # Pass channels_last=False to skip the extra HBM round trip.
            return jnp.transpose(out_cf, (0, 2, 1)) if channels_last else out_cf

        assert x.shape[0] == 1 or x.shape[0] == B, 'Batch size does not match.'
        xB, N = x.shape[0], x.shape[1]
        x = x.astype(jnp.float32)

        shared = (xB == 1)                          # shared-query fast path
        use_separable = HW > 2048                   # large local grid
        b_in_kernel = B if shared else 1
        tn = _pick_tile_n(N, H, W, Dl, C, b_in_kernel, budget, use_separable)
        n_pad = pl.cdiv(N, tn) * tn
        if n_pad != N:
            x = jnp.pad(x, ((0, 0), (0, n_pad - N), (0, 0)))
        # Coords-first layout so the kernel reads lane-dense coordinate rows.
        xt = jnp.transpose(x, (0, 2, 1))            # (xB, 2, n_pad)

        if shared:
            # Batch folded into the kernel: the scatter weights and the x tile
            # are built/DMA'd once per N tile instead of once per batch.
            if use_separable:
                l2d = l.reshape(B * Dl * H, W)
                l_spec = pl.BlockSpec((B * Dl * H, W), lambda j: (0, 0))
            else:
                l2d = l.reshape(B * Dl, HW)
                l_spec = pl.BlockSpec((B * Dl, HW), lambda j: (0, 0))
            # NOTE: the constant-index latent spec still gets 2 buffers; a
            # pipeline_mode=Buffered(1) hint could halve that on v7x.
            kern = functools.partial(_grid_sample_shared_kernel, H=H, W=W, B=B,
                                     Dl=Dl, use_separable=use_separable)
            out_cf = pl.pallas_call(
                kern,
                out_shape=jax.ShapeDtypeStruct((B, C, n_pad), jnp.float32),
                grid=(n_pad // tn,),
                in_specs=[
                    pl.BlockSpec((B, Dg, 1), lambda j: (0, 0, 0)),
                    l_spec,
                    pl.BlockSpec((1, 2, tn), lambda j: (0, 0, j)),
                ],
                out_specs=pl.BlockSpec((B, C, tn), lambda j: (0, 0, j)),
                compiler_params=pltpu.CompilerParams(
                    dimension_semantics=("parallel",),
                    vmem_limit_bytes=vmem_limit),
            )(g3, l2d, xt)
        else:
            if use_separable:
                l3d = l.reshape(B, Dl * H, W)
                l_spec = pl.BlockSpec((1, Dl * H, W), lambda b, j: (b, 0, 0))
            else:
                l3d = l.reshape(B, Dl, HW)
                l_spec = pl.BlockSpec((1, Dl, HW), lambda b, j: (b, 0, 0))
            kern = functools.partial(_grid_sample_batched_kernel, H=H, W=W,
                                     Dl=Dl, use_separable=use_separable)
            out_cf = pl.pallas_call(
                kern,
                out_shape=jax.ShapeDtypeStruct((B, C, n_pad), jnp.float32),
                grid=(B, n_pad // tn),
                in_specs=[
                    pl.BlockSpec((1, Dg, 1), lambda b, j: (b, 0, 0)),
                    l_spec,   # same block across N -> latent resident per batch
                    pl.BlockSpec((1, 2, tn), lambda b, j: (b, 0, j)),
                ],
                out_specs=pl.BlockSpec((1, C, tn), lambda b, j: (b, 0, j)),
                # b leading & parallel so v7x's megacore splits on batch and
                # keeps one resident latent per TensorCore.
                compiler_params=pltpu.CompilerParams(
                    dimension_semantics=("parallel", "arbitrary"),
                    vmem_limit_bytes=vmem_limit),
            )(g3, l3d, xt)

        if n_pad != N:
            out_cf = out_cf[:, :, :N]
        return jnp.transpose(out_cf, (0, 2, 1)) if channels_last else out_cf

    __call__ = forward

    def reg(self):
        g = self.global_latent
        l = self.local_latent
        return (jnp.mean(jnp.linalg.norm(g, axis=1))
                + jnp.mean(jnp.linalg.norm(l, axis=1)))


class LatentCodeTable:
    def __init__(self, global_dim, local_dim, data_num, local_shape, key,
                 global_max=1.0, local_max=1.0):
        kg, kl = jax.random.split(key)
        self.global_latent = (
            jax.random.normal(kg, (data_num, global_dim), jnp.float32)
            / math.sqrt(global_dim))
        self.local_latent = (
            jax.random.normal(kl, (data_num, local_dim, *local_shape),
                              jnp.float32) / math.sqrt(local_dim))

    def forward(self, idx):
        # Table gather is XLA glue; the heavy lifting is in HybridLatentCode.
        return HybridLatentCode(self.global_latent[idx], self.local_latent[idx])

    __call__ = forward

    def reg(self, idx):
        g = self.global_latent[idx]
        l = self.local_latent[idx]
        return (jnp.mean(jnp.linalg.norm(g, axis=1))
                + jnp.mean(jnp.linalg.norm(l, axis=1)))


# ------------------------------ JAX references ------------------------------ #

def _ref_no_query(g, l):
    B, Dg = g.shape
    Dl, H, W = l.shape[1], l.shape[2], l.shape[3]
    l_flat = l.reshape(B, Dl, H * W)
    gb = jnp.broadcast_to(g[:, :, None], (B, Dg, H * W))
    return jnp.transpose(jnp.concatenate([gb, l_flat], axis=1), (0, 2, 1))


def _ref_grid_sample(g, l, x):
    B, Dg = g.shape
    Dl, H, W = l.shape[1], l.shape[2], l.shape[3]
    if x.shape[0] != B:
        x = jnp.broadcast_to(x, (B,) + x.shape[1:])
    gy, gx = x[..., 0], x[..., 1]
    fx = jnp.clip((gx + 1.0) * 0.5 * (W - 1), 0.0, W - 1.0)
    fy = jnp.clip((gy + 1.0) * 0.5 * (H - 1), 0.0, H - 1.0)
    x0f = jnp.floor(fx); y0f = jnp.floor(fy)
    wx1 = fx - x0f; wy1 = fy - y0f
    x0 = jnp.clip(x0f.astype(jnp.int32), 0, W - 1)
    y0 = jnp.clip(y0f.astype(jnp.int32), 0, H - 1)
    x1 = jnp.minimum(x0 + 1, W - 1)
    y1 = jnp.minimum(y0 + 1, H - 1)
    lf = l.reshape(B, Dl, H * W)

    def tap(yi, xi, w):
        f = yi * W + xi
        v = jnp.take_along_axis(lf, f[:, None, :], axis=2)
        return v * w[:, None, :]

    s = (tap(y0, x0, (1 - wy1) * (1 - wx1)) + tap(y0, x1, (1 - wy1) * wx1)
         + tap(y1, x0, wy1 * (1 - wx1)) + tap(y1, x1, wy1 * wx1))
    gb = jnp.broadcast_to(g[:, :, None], (B, Dg, s.shape[-1]))
    return jnp.transpose(jnp.concatenate([gb, s], axis=1), (0, 2, 1))


# ----------------------------------- main ----------------------------------- #

if __name__ == "__main__":
    key = jax.random.PRNGKey(0)

    def run_case(k, data_num, global_dim, local_dim, local_shape, idx,
                 n_shared, n_batched, atol=2e-5):
        k_tab, kx1, kx2 = jax.random.split(k, 3)
        table = LatentCodeTable(global_dim, local_dim, data_num, local_shape,
                                k_tab)
        code = table(idx)
        B = idx.shape[0]
        C = global_dim + local_dim
        HW = local_shape[0] * local_shape[1]

        # Path A: no query points -> (B, H*W, Dg+Dl)
        out_a = jax.block_until_ready(code.forward(None))
        ref_a = _ref_no_query(code.global_latent, code.local_latent)
        assert out_a.shape == (B, HW, C)
        assert jnp.allclose(out_a, ref_a, atol=atol), "no-query mismatch"

        # Path B: shared queries (1, N, 2) -> shared-x fast path (+ padding).
        x1 = jax.random.uniform(kx1, (1, n_shared, 2), jnp.float32,
                                minval=-1.0, maxval=1.0)
        out_b = jax.block_until_ready(code.forward(x1))
        ref_b = _ref_grid_sample(code.global_latent, code.local_latent, x1)
        assert out_b.shape == (B, n_shared, C)
        assert jnp.allclose(out_b, ref_b, atol=atol), "shared-x mismatch"

        # Path C: per-batch queries (B, N, 2) -> batched path.
        x2 = jax.random.uniform(kx2, (B, n_batched, 2), jnp.float32,
                                minval=-1.0, maxval=1.0)
        out_c = jax.block_until_ready(code.forward(x2))
        ref_c = _ref_grid_sample(code.global_latent, code.local_latent, x2)
        assert out_c.shape == (B, n_batched, C)
        assert jnp.allclose(out_c, ref_c, atol=atol), "batched-x mismatch"

    k1, k2 = jax.random.split(key)
    idx = jnp.array([3, 7], dtype=jnp.int32)            # B = 2
    # Small config: dense single-matmul scatter, single N tile, tiny-N path.
    run_case(k1, 16, 8, 8, (8, 8), idx, n_shared=384, n_batched=8)
    # Larger spatial grid (HW=2304): separable two-stage contraction, the
    # no-query tf|HW fix (tf=256, 9 tiles), and N padding (300->384, 200->256).
    run_case(k2, 16, 8, 8, (48, 48), idx, n_shared=300, n_batched=200)

    print("KERNEL_OK")
</pallas_src>

<mosaic_0001>
module attributes {stable_mosaic.version = 11 : i64} {
  func.func @_concat_cf_kernel(%arg0: i32, %arg1: i32, %arg2: memref<1x8x1xf32, #tpu.memory_space<vmem>>, %arg3: memref<1x8x64xf32, #tpu.memory_space<vmem>>, %arg4: memref<1x16x64xf32, #tpu.memory_space<vmem>>) attributes {dimension_semantics = [#tpu.dimension_semantics<parallel>, #tpu.dimension_semantics<parallel>], iteration_bounds = array<i64: 2, 1>, scalar_prefetch = 0 : i64, scratch_operands = 0 : i64, tpu.core_type = #tpu.core_type<tc>, window_params = [{transform_indices = @transform_0, window_bounds = array<i64: 1, 8, 1>}, {transform_indices = @transform_1, window_bounds = array<i64: 1, 8, 64>}, {transform_indices = @transform_2, window_bounds = array<i64: 1, 16, 64>}]} {
    %c0 = arith.constant 0 : index
    %c0_0 = arith.constant 0 : index
    %c0_1 = arith.constant 0 : index
    %0 = vector.load %arg2[%c0, %c0_0, %c0_1] : memref<1x8x1xf32, #tpu.memory_space<vmem>>, vector<1x8x1xf32>
    %1 = vector.shape_cast %0 : vector<1x8x1xf32> to vector<8x1xf32>
    %2 = vector.shape_cast %1 : vector<8x1xf32> to vector<8x1xf32>
    %3 = vector.broadcast %2 : vector<8x1xf32> to vector<8x64xf32>
    %c0_2 = arith.constant 0 : index
    %c0_3 = arith.constant 0 : index
    %c0_4 = arith.constant 0 : index
    %4 = vector.load %arg4[%c0_2, %c0_3, %c0_4] : memref<1x16x64xf32, #tpu.memory_space<vmem>>, vector<1x8x64xf32>
    %5 = vector.shape_cast %4 : vector<1x8x64xf32> to vector<8x64xf32>
    %6 = vector.shape_cast %3 : vector<8x64xf32> to vector<1x8x64xf32>
    tpu.vector_store %arg4[%c0_2, %c0_3, %c0_4], %6 {strides = array<i32>} : memref<1x16x64xf32, #tpu.memory_space<vmem>>, vector<1x8x64xf32>,
    %c0_5 = arith.constant 0 : index
    %c0_6 = arith.constant 0 : index
    %c0_7 = arith.constant 0 : index
    %7 = vector.load %arg3[%c0_5, %c0_6, %c0_7] : memref<1x8x64xf32, #tpu.memory_space<vmem>>, vector<1x8x64xf32>
    %8 = vector.shape_cast %7 : vector<1x8x64xf32> to vector<8x64xf32>
    %c0_8 = arith.constant 0 : index
    %c8 = arith.constant 8 : index
    %c0_9 = arith.constant 0 : index
    %9 = vector.load %arg4[%c0_8, %c8, %c0_9] : memref<1x16x64xf32, #tpu.memory_space<vmem>>, vector<1x8x64xf32>
    %10 = vector.shape_cast %9 : vector<1x8x64xf32> to vector<8x64xf32>
    %11 = vector.shape_cast %8 : vector<8x64xf32> to vector<1x8x64xf32>
    tpu.vector_store %arg4[%c0_8, %c8, %c0_9], %11 {strides = array<i32>} : memref<1x16x64xf32, #tpu.memory_space<vmem>>, vector<1x8x64xf32>,
    return
  }
  func.func @transform_0(%arg0: i32, %arg1: i32) -> (i32, i32, i32) {
    %c0_i32 = arith.constant 0 : i32
    %c0_i32_0 = arith.constant 0 : i32
    %c0_i32_1 = arith.constant 0 : i32
    return %arg0, %c0_i32, %c0_i32_0 : i32, i32, i32
  }
  func.func @transform_1(%arg0: i32, %arg1: i32) -> (i32, i32, i32) {
    %c0_i32 = arith.constant 0 : i32
    %c0_i32_0 = arith.constant 0 : i32
    return %arg0, %c0_i32, %arg1 : i32, i32, i32
  }
  func.func @transform_2(%arg0: i32, %arg1: i32) -> (i32, i32, i32) {
    %c0_i32 = arith.constant 0 : i32
    %c0_i32_0 = arith.constant 0 : i32
    return %arg0, %c0_i32, %arg1 : i32, i32, i32
  }
}

</mosaic_0001>

<bundles_post_ra>
// kernel: tpu_custom_call.1
= control target key start
LH: loop header
LB: loop body
LE: loop exit
PB: predicated region body
PF: predicated region fallthrough
CT: control target
= control target key end

     0   :  { %7 = vsyncpa [#allocation3], 0  ;;  %s583_s0 = inlined_call_operand.vmem [shape: f32[2,8,1], index: 0, kind: input, shape index: {}]   ;;  %s584_s1 = inlined_call_operand.vmem [shape: f32[2,8,64], index: 1, kind: input, shape index: {}]   ;;  %s585_s2 = inlined_call_operand.hbm [shape: f32[2,16,64], index: 2, kind: output, shape index: {}]  }
   0x1   :  { %9 = vsyncpa [#allocation3 + $0x1], 0  ;;  %s465_s9 = smov 0   ;;  %s467_s10 = smov 0  }
   0x2   :  { %s469_s11 = smov 0   ;;  %s471_s12 = smov 0  }
   0x3   :  { %s473_s13 = smov 0   ;;  %s475_s14 = smov 0  }
   0x4 LB: > { %s293_s15 = sadd.s32 4294967295, %s444_s14   ;;  %s294_s16 = sadd.s32 4294967294, %s444_s14   ;;  %s444_s14 = sphi %s475_s14, %s15_s14   ;;  %s440_s13 = sphi %s473_s13, %s592_s13   ;;  %s436_s12 = sphi %s471_s12, %s591_s12   ;;  %s432_s11 = sphi %s469_s11, %s590_s11   ;;  %s428_s10 = sphi %s467_s10, %s589_s10   ;;  %s424_s9 = sphi %s465_s9, %s588_s9  }
   0x5   : > { %s27_s17 = sadd.s32 1, %s440_s13  ;;  %s90_s18 = sadd.s32 1, %s432_s11 }
   0x6   : > { %p29_p0 = scmp.ge.s32.totalorder %s27_s17, 2  ;;  %p100_p1 = scmp.ne.s32.totalorder %s432_s11, %s428_s10 }
   0x7   : > { %p101_p2 = scmp.eq.s32.totalorder %s293_s15, 1  ;;  %p106_p3 = scmp.ne.s32.totalorder %s428_s10, %s424_s9 }
   0x8   : > { %s594_s17 = smov (%p29_p0, %s27_s17), 0  ;;  %p107_p5 = scmp.eq.s32.totalorder %s294_s16, 1 }
   0x9   : > { %p505_p4 = por %p101_p2, %p100_p1  ;;  %s85_s20 = ssub.s32 %s440_s13, %s594_s17 }
   0xa   : > { %p297_p6 = scmp.ge.s32.totalorder %s444_s14, 1  ;;  %p88_p7 = scmp.eq.s32.totalorder %s85_s20, 0 }
   0xb   : > { %p512_p8 = por %p107_p5, %p106_p3  ;;  %p142_p9 = scmp.lt.s32.totalorder %s444_s14, 3 }
   0xc   : > { %s518_s22 = scalar_select %p88_p7, %s432_s11, %s90_s18  }
   0xd   : > { %p143_p10 = pnand %p297_p6, %p142_p9 }
   0xe   : > { %p170_p11 = scmp.lt.s32.totalorder (!%p143_p10), %s436_s12, 1  ;;  %v446_v0 = vmov (!%p143_p10), 0   ;;  %s167_s24 = sand.u32 (!%p143_p10), 1, %s428_s10   ;;  %vm187_vm0 = vcmask (!%p143_p10), 523264  }
   0xf   : > { %146 = sbr.rel (%p143_p10) target bundleno = 170 (0xaa), region = 28  ;;  %365 = vset.pattern.permute.xlu0 (!%p143_p10), %v446_v0  ;;  %s298_s26 = sshll.u32 (!%p143_p10), %s167_s24, 4 }
  0x10   : > { %s169_s5 = scalar_lea.vmem (!%p143_p10), [#allocation2], %s298_s26  ;;  %s306_s7 = sshll.u32 (!%p143_p10), %s436_s12, 8 }
  0x11   : > { %s206_s6 = sshll.u32 (!%p143_p10), %s169_s5, 4  ;;  %s535_s16 = scalar_lea.hbm (!%p143_p10), %s585_s2, %s306_s7  ;;  %s530_s6 = int_to_ptr.vmem [resolvable:$true] %s206_s6 }
  0x12   : > { %s537_s18 = scalar_lea.sflag (!%p143_p10), [#allocation3], %s167_s24  ;;  %s366_s20 = scalar_lea.vmem (!%p143_p10), %s530_s6, 256 }
  0x13   : > { %p367_p12 = scmp.ne.s32.totalorder (!%p143_p10), %s530_s6, %s366_s20 }
  0x15   : > { %p368_p13 = pnand (!%p143_p10), %p367_p12, %p505_p4 }
  0x16   : > { %s171_s23 = scalar_select %p170_p11, %s436_s12, 1 }
  0x17   : > { %p369_p0 = pneg %p368_p13  ;;  %s447_s12 = smov [#allocation2]  }
  0x18   : > { %s299_s25 = sshll.u32 %s171_s23, 3  ;;  %s370_s23 = sshll.u32 %s447_s12, 4  ;;  %s371_s23 = int_to_ptr.vmem [resolvable:$false] %s370_s23 }
  0x19   : > { %s173_s29 = scalar_lea.vmem %s583_s0, %s299_s25  ;;  %s180_s4 = scalar_lea.vmem %s584_s1, %s299_s25 }
  0x1a   : > { %v181_v1 = vld [vmem:[%s173_s29] sm:$0xff]  ;;  %s372_s25 = scalar_lea.vmem %s371_s23, 512  ;;  %p373_p1 = scmp.lt.s32.totalorder %s530_s6, %s371_s23 }
  0x1b   : > { %v189_v2 = vld [vmem:[%s180_s4] sm:$0xff]  ;;  %184 = vperm.xlu0 %365, %v181_v1   ;;  %p374_p2 = scmp.lt.s32.totalorder %s372_s25, %s366_s20 }
  0x1c   : > { %190 = vst.msk [vmem:[%s169_s5 + $0x8] sm:$0xff] %vm187_vm0, %v189_v2 }
  0x1d   : > { %p375_p3 = por %p374_p2, %p373_p1 }
  0x1f   : > { %p376_p5 = pnand %p375_p3, %p369_p0 }
  0x9a   : > { %v185_v3 = vpop.permute.xlu0 %184 }
  0x9b   : > { %188 = vst.msk [vmem:[%s169_s5] sm:$0xff] %vm187_vm0, %v185_v3 }
  0x9c   : > { %379 = shalt.err (!%p376_p5)
}
  0x9d   : > { %s380_s24 = scalar_lea.hbm %s535_s16, 256  ;;  %s384_s28 = scalar_lea.hbm %s585_s2, 512 }
  0x9e   : > { %p381_p6 = scmp.ne.s32.totalorder %s535_s16, %s380_s24  ;;  %p385_p10 = scmp.lt.u32.totalorder %s535_s16, %s585_s2 }
  0x9f   : > { %p386_p11 = scmp.lt.u32.totalorder %s384_s28, %s380_s24  ;;  %p388_p13 = scmp.lt.u32.totalorder %s380_s24, %s535_s16 }
  0xa0   : > { %p382_p7 = pnand %p381_p6, %p505_p4 }
  0xa1   : > { %p387_p12 = por %p386_p11, %p385_p10 }
  0xa2   : > { %p383_p9 = pneg %p382_p7 }
  0xa3   : > { %p389_p0 = por %p388_p13, %p387_p12 }
  0xa5   : > { %p390_p1 = pnand %p389_p0, %p383_p9 }
  0xa7   : > { %393 = shalt.err (!%p390_p1)
}
  0xa8   : > { %s448_s3 = smov 128   ;;  %s449_s4 = smov 8  }
  0xa9   : > { %307 = dma.vmem_to_hbm [thread:$0]  (%p505_p4), %s530_s6, 256, %s535_s16, %s537_s18, %s448_s3, %s448_s3, %s449_s4  }
  0xaa PF: > { %p313_p2 = scmp.ge.s32.totalorder %s444_s14, 2  ;;  %s221_s5 = sand.u32 1, %s424_s9  }
  0xab   : > { %s222_s7 = scalar_lea.sflag [#allocation3], %s221_s5 }
  0xac   : > { %p310_p3 = pnand %p313_p2, %p512_p8 }
  0xae   : > { %419 = dma.done.wait (!%p310_p3), %s222_s7, 256  }
  0xaf   : > { %421 = vsyncadd (!%p310_p3), %s222_s7, 4294967040  ;;  %s15_s14 = sadd.s32 1, %s444_s14   ;;  %s588_s9 = smov %s428_s10 }
  0xb0   : > { %p12_p5 = scmp.ge.s32.totalorder %s15_s14, 4   ;;  %s589_s10 = smov %s432_s11 }
  0xb1   : > { %s590_s11 = smov %s518_s22  ;;  %s591_s12 = smov %s440_s13 }
  0xb2   : > { %s592_s13 = smov %s594_s17  ;;  %14 = sbr.rel (!%p12_p5) target bundleno = 4 (0x4), region = 66 }
  0xb9   :  { %227 = vsyncpa [#allocation3], 1 }
  0xba   :  { %229 = vsyncpa [#allocation3 + $0x1], 1 }

</bundles_post_ra>
